<compile_context>
chip_gen: v6e
topology: v6e:2x2x1
jax: 0.10.0
libtpu: 0.0.40
codegen_flags: <defaults>
</compile_context>

<pallas_src>
import jax
import jax.numpy as jnp
from jax.experimental import pallas as pl
from jax.experimental.pallas import tpu as pltpu


# Below this many MACs the Pallas-call overhead dominates -> use plain jnp.dot.
_SMALL_PROBLEM_THRESHOLD = 1 << 20  # ~1e6 multiply-adds


def _round_up(x, m):
    return ((x + m - 1) // m) * m


def _device_config():
    """Return (tm, tn, tk_f32, tk_bf16, vmem_limit_bytes, num_tensorcores)."""
    try:
        kind = jax.devices()[0].device_kind.lower()
    except Exception:  # pragma: no cover - defensive
        kind = ""
    if "v5 lite" in kind or "v5e" in kind or "v5litepod" in kind:
        # v5e: 4x128x128 MXU, ~820 GB/s HBM, 128 MiB physical VMEM, 1 TC.
        # f32 footprint @ (512,512,512), double-buffered: ~7 MiB.
        return 512, 512, 512, 1024, 64 * 1024 * 1024, 1
    if "v6" in kind:
        # v6e: 2x256x256 MXU, ~1.4 TB/s HBM, 128 MiB physical VMEM, 1 TC.
        # f32 footprint @ (512,1024,1024): ~18 MiB; bf16 @ tk=2048: ~16 MiB.
        return 512, 1024, 1024, 2048, 96 * 1024 * 1024, 1
    if "7x" in kind or "v7" in kind:
        # v7x: 64 MiB physical VMEM per TC, 2 TCs/chip, ~3.2 TB/s HBM.
        # f32 footprint @ (512,512,1024): ~11 MiB, well under the 56 MiB cap.
        return 512, 512, 1024, 2048, 56 * 1024 * 1024, 2
    # Unknown generation: use the v7x-safe budget (correct everywhere).
    return 512, 512, 512, 1024, 56 * 1024 * 1024, 2


def _matmul_kernel(lhs_ref, rhs_ref, out_ref, acc_ref):
    """One (tm, tn) output tile; accumulate over the K grid axis (axis 2)."""

    @pl.when(pl.program_id(2) == 0)
    def _():
        acc_ref[...] = jnp.zeros_like(acc_ref)

    acc_ref[...] += jnp.dot(
        lhs_ref[...], rhs_ref[...], preferred_element_type=jnp.float32
    )

    @pl.when(pl.program_id(2) == pl.num_programs(2) - 1)
    def _():
        out_ref[...] = acc_ref[...].astype(out_ref.dtype)


def _pallas_matmul(lhs, rhs, *, cast_to_bf16=False):
    """Tiled Pallas matmul (M, K) @ (K, N) -> (M, N) with f32 accumulation."""
    M, K = lhs.shape
    K2, N = rhs.shape
    assert K == K2, f"inner dims mismatch: {lhs.shape} @ {rhs.shape}"
    out_dtype = jnp.promote_types(lhs.dtype, rhs.dtype)

    # Optional bf16 operand cast (MXUs are bf16-native); accumulation stays
    # f32 and the result is cast back to the original promoted dtype.
    if cast_to_bf16 and jnp.issubdtype(out_dtype, jnp.floating):
        lhs = lhs.astype(jnp.bfloat16)
        rhs = rhs.astype(jnp.bfloat16)

    tm0, tn0, tk_f32, tk_bf16, vmem_limit, num_cores = _device_config()
    both_bf16 = lhs.dtype == jnp.bfloat16 and rhs.dtype == jnp.bfloat16
    tk0 = tk_bf16 if both_bf16 else tk_f32

    # Lane-dense output without per-call transposes: pad a sub-vreg-width N up
    # to one full 128-lane vreg (unmasked vst) in the original orientation.
    n_out = N
    if N < 128:
        rhs = jnp.pad(rhs, ((0, 0), (0, 128 - N)))
        n_out = 128

    # Clamp tiles to the problem (full-extent blocks are exempt from the
    # (8,128) divisibility rule); otherwise keep aligned tiles and let Pallas
    # handle the M/N tail blocks by masking.
    tm = M if M <= tm0 else tm0
    tn = n_out if n_out <= tn0 else tn0
    tk = K if K <= tk0 else tk0

    # v7x has 2 TensorCores: keep at least two (i, j) blocks so the 'parallel'
    # axes can be megacore-sharded instead of running on one core.
    if num_cores >= 2 and pl.cdiv(M, tm) * pl.cdiv(n_out, tn) < 2:
        if n_out > 128:
            tn = max(128, _round_up(pl.cdiv(n_out, 2), 128))
        elif M > 8:
            tm = max(8, _round_up(pl.cdiv(M, 2), 8))

    # Zero-pad only the K (reduction) dim when the K tile does not divide it:
    # zeros keep the accumulation exact.  M/N tails need no padding (masked
    # edge blocks), avoiding full-array HBM pad copies.
    Kp = _round_up(K, tk)
    if Kp != K:
        lhs = jnp.pad(lhs, ((0, 0), (0, Kp - K)))
        rhs = jnp.pad(rhs, ((0, Kp - K), (0, 0)))

    grid = (pl.cdiv(M, tm), pl.cdiv(n_out, tn), Kp // tk)

    lhs_item = jnp.dtype(lhs.dtype).itemsize
    rhs_item = jnp.dtype(rhs.dtype).itemsize
    out_item = jnp.dtype(out_dtype).itemsize
    # Actual HBM traffic: lhs is re-read once per N-tile, rhs once per M-tile.
    bytes_accessed = (
        M * Kp * lhs_item * grid[1]
        + Kp * n_out * rhs_item * grid[0]
        + M * n_out * out_item
    )

    out = pl.pallas_call(
        _matmul_kernel,
        out_shape=jax.ShapeDtypeStruct((M, n_out), out_dtype),
        grid_spec=pltpu.PrefetchScalarGridSpec(
            num_scalar_prefetch=0,
            grid=grid,
            in_specs=[
                pl.BlockSpec((tm, tk), lambda i, j, k: (i, k)),
                pl.BlockSpec((tk, tn), lambda i, j, k: (k, j)),
            ],
            out_specs=pl.BlockSpec((tm, tn), lambda i, j, k: (i, j)),
            scratch_shapes=[pltpu.VMEM((tm, tn), jnp.float32)],
        ),
        compiler_params=pltpu.CompilerParams(
            dimension_semantics=("parallel", "parallel", "arbitrary"),
            vmem_limit_bytes=vmem_limit,
        ),
        cost_estimate=pl.CostEstimate(
            flops=2 * M * n_out * Kp,
            transcendentals=0,
            bytes_accessed=bytes_accessed,
        ),
    )(lhs, rhs)

    if n_out != N:
        out = out[:, :N]
    return out


def pallas_matmul(lhs, rhs, *, force_pallas=False, cast_to_bf16=False):
    """Matmul wrapper: tiny-shape fallback, then the tiled Pallas kernel."""
    M, K = lhs.shape
    K2, N = rhs.shape
    assert K == K2, f"inner dims mismatch: {lhs.shape} @ {rhs.shape}"

    # Tiny problems: a single partially-filled MXU pass; Pallas per-call
    # overhead + HBM->VMEM DMAs dominate, so let XLA's fused dot handle it.
    if not force_pallas and (M * N * K) < _SMALL_PROBLEM_THRESHOLD:
        return jnp.dot(lhs, rhs)

    return _pallas_matmul(lhs, rhs, cast_to_bf16=cast_to_bf16)


class TorchMatmulPallas:
    """JAX/Pallas equivalent of TorchMatmul.

    torch.empty is uninitialized and wtype (Parameter vs Tensor) has no JAX
    analogue here, so the weight is materialized as a reproducible random
    tensor of the requested shape/dtype.
    """

    def __init__(self, weight_shape, dtype, order, key, *, wtype=None,
                 cast_to_bf16=False):
        self.order = order
        self.dtype = dtype
        self.wtype = wtype
        self.cast_to_bf16 = cast_to_bf16
        self.a = jax.random.normal(key, weight_shape, dtype=dtype)

    def __call__(self, inputs):
        if self.order == "pre":
            return pallas_matmul(self.a, inputs, cast_to_bf16=self.cast_to_bf16)
        elif self.order == "post":
            return pallas_matmul(inputs, self.a, cast_to_bf16=self.cast_to_bf16)
        else:
            raise NotImplementedError(f"undefined order {self.order}")


def _rel_err(out, ref):
    out = out.astype(jnp.float32)
    ref = ref.astype(jnp.float32)
    return float(jnp.linalg.norm(out - ref) / (jnp.linalg.norm(ref) + 1e-6))


if __name__ == "__main__":
    key = jax.random.PRNGKey(0)
    k_w, k_x, k_w2, k_x2, k_w3, k_x3, k_a, k_b = jax.random.split(key, 8)
    f32 = jnp.float32

    # ---- Case 1: tiny module shapes (seq=8, hidden=32) as in the original
    # config.  The wrapper falls back to jnp.dot here (per perf review).
    hidden, seq = 32, 8
    mod_post = TorchMatmulPallas((hidden, hidden), f32, "post", k_w)
    x_post = jax.random.normal(k_x, (seq, hidden), dtype=f32)
    out_post = jax.block_until_ready(mod_post(x_post))
    ref_post = jnp.dot(x_post, mod_post.a, precision=jax.lax.Precision.HIGHEST)
    assert out_post.shape == (seq, hidden)
    assert _rel_err(out_post, ref_post) < 1e-2

    mod_pre = TorchMatmulPallas((hidden, hidden), f32, "pre", k_w)
    x_pre = jax.random.normal(k_x, (hidden, seq), dtype=f32)
    out_pre = jax.block_until_ready(mod_pre(x_pre))
    ref_pre = jnp.dot(mod_pre.a, x_pre, precision=jax.lax.Precision.HIGHEST)
    assert out_pre.shape == (hidden, seq)
    assert _rel_err(out_pre, ref_pre) < 1e-2

    # ---- Case 2: same tiny shapes forced through the tiled Pallas kernel
    # (full-extent blocks, narrow-N lane-dense pad path, grid = (1,1,1)).
    out_forced = jax.block_until_ready(
        pallas_matmul(x_post, mod_post.a, force_pallas=True)
    )
    assert _rel_err(out_forced, ref_post) < 1e-2

    # ---- Case 3: modest shapes through the tiled Pallas kernel (f32 + bf16).
    hidden2, seq2 = 512, 256
    mod_big = TorchMatmulPallas((hidden2, hidden2), f32, "post", k_w2)
    x_big = jax.random.normal(k_x2, (seq2, hidden2), dtype=f32)
    out_big = jax.block_until_ready(mod_big(x_big))
    ref_big = jnp.dot(x_big, mod_big.a, precision=jax.lax.Precision.HIGHEST)
    assert out_big.shape == (seq2, hidden2)
    assert _rel_err(out_big, ref_big) < 1e-2

    mod_bf16 = TorchMatmulPallas((hidden2, hidden2), jnp.bfloat16, "post", k_w3)
    x_bf16 = jax.random.normal(k_x3, (seq2, hidden2), dtype=jnp.bfloat16)
    out_bf16 = jax.block_until_ready(mod_bf16(x_bf16))
    ref_bf16 = jnp.dot(
        x_bf16.astype(f32), mod_bf16.a.astype(f32),
        precision=jax.lax.Precision.HIGHEST,
    )
    assert out_bf16.dtype == jnp.bfloat16
    assert _rel_err(out_bf16, ref_bf16) < 2e-2

    # ---- Case 4: multi-step K reduction + non-tile-divisible M/N edge blocks
    # (exercises the accumulator init/finalize and masked tail handling).
    a_big = jax.random.normal(k_a, (256, 1536), dtype=f32)
    b_big = jax.random.normal(k_b, (1536, 384), dtype=f32)
    out_k = jax.block_until_ready(pallas_matmul(a_big, b_big, force_pallas=True))
    ref_k = jnp.dot(a_big, b_big, precision=jax.lax.Precision.HIGHEST)
    assert out_k.shape == (256, 384)
    assert _rel_err(out_k, ref_k) < 1e-2

    # ---- Case 5: order='pre' with a narrow output last dim (lane-dense pad,
    # no per-call transposes) forced through the Pallas kernel.
    x_pre_big = jax.random.normal(k_x2, (hidden2, 64), dtype=f32)
    out_pre_big = jax.block_until_ready(
        pallas_matmul(mod_big.a, x_pre_big, force_pallas=True)
    )
    ref_pre_big = jnp.dot(mod_big.a, x_pre_big,
                          precision=jax.lax.Precision.HIGHEST)
    assert out_pre_big.shape == (hidden2, 64)
    assert _rel_err(out_pre_big, ref_pre_big) < 1e-2

    # ---- Case 6: opt-in bf16 operand cast path (f32 accumulation).
    out_cast = jax.block_until_ready(
        pallas_matmul(x_big, mod_big.a, force_pallas=True, cast_to_bf16=True)
    )
    assert _rel_err(out_cast, ref_big) < 2e-2

    print("KERNEL_OK")
</pallas_src>

<mosaic_0001>
module attributes {stable_mosaic.version = 11 : i64} {
  func.func @_matmul_kernel(%arg0: i32, %arg1: i32, %arg2: i32, %arg3: memref<8x32xf32, #tpu.memory_space<vmem>>, %arg4: memref<32x128xf32, #tpu.memory_space<vmem>>, %arg5: memref<8x128xf32, #tpu.memory_space<vmem>>, %arg6: memref<8x128xf32, #tpu.memory_space<vmem>>) attributes {dimension_semantics = [#tpu.dimension_semantics<parallel>, #tpu.dimension_semantics<parallel>, #tpu.dimension_semantics<arbitrary>], iteration_bounds = array<i64: 1, 1, 1>, scalar_prefetch = 0 : i64, scratch_operands = 1 : i64, tpu.core_type = #tpu.core_type<tc>, window_params = [{transform_indices = @transform_0, window_bounds = array<i64: 8, 32>}, {transform_indices = @transform_1, window_bounds = array<i64: 32, 128>}, {transform_indices = @transform_2, window_bounds = array<i64: 8, 128>}]} {
    %c0_i32 = arith.constant 0 : i32
    %0 = arith.cmpi eq, %arg2, %c0_i32 : i32
    %1 = arith.extui %0 : i1 to i32
    %c0_i32_0 = arith.constant 0 : i32
    %2 = arith.cmpi ne, %1, %c0_i32_0 : i32
    scf.if %2 {
      %cst_10 = arith.constant 0.000000e+00 : f32
      %12 = vector.broadcast %cst_10 : f32 to vector<8x128xf32>
      %c0_11 = arith.constant 0 : index
      %c0_12 = arith.constant 0 : index
      %13 = vector.load %arg6[%c0_11, %c0_12] : memref<8x128xf32, #tpu.memory_space<vmem>>, vector<8x128xf32>
      tpu.vector_store %arg6[%c0_11, %c0_12], %12 {strides = array<i32>} : memref<8x128xf32, #tpu.memory_space<vmem>>, vector<8x128xf32>,
    } else {
    }
    %c0 = arith.constant 0 : index
    %c0_1 = arith.constant 0 : index
    %3 = vector.load %arg6[%c0, %c0_1] : memref<8x128xf32, #tpu.memory_space<vmem>>, vector<8x128xf32>
    %c0_2 = arith.constant 0 : index
    %c0_3 = arith.constant 0 : index
    %4 = vector.load %arg3[%c0_2, %c0_3] : memref<8x32xf32, #tpu.memory_space<vmem>>, vector<8x32xf32>
    %c0_4 = arith.constant 0 : index
    %c0_5 = arith.constant 0 : index
    %5 = vector.load %arg4[%c0_4, %c0_5] : memref<32x128xf32, #tpu.memory_space<vmem>>, vector<32x128xf32>
    %cst = arith.constant dense<0.000000e+00> : vector<8x128xf32>
    %6 = tpu.matmul %4, %5, %cst {dimension_numbers = #tpu.dot_dimension_numbers<[1], [0], [0], [1], [0, 0, 1, 1], [], []>} : vector<8x32xf32>, vector<32x128xf32>, vector<8x128xf32> -> vector<8x128xf32>
    %7 = arith.addf %3, %6 : vector<8x128xf32>
    %c0_6 = arith.constant 0 : index
    %c0_7 = arith.constant 0 : index
    %8 = vector.load %arg6[%c0_6, %c0_7] : memref<8x128xf32, #tpu.memory_space<vmem>>, vector<8x128xf32>
    tpu.vector_store %arg6[%c0_6, %c0_7], %7 {strides = array<i32>} : memref<8x128xf32, #tpu.memory_space<vmem>>, vector<8x128xf32>,
    %c0_i32_8 = arith.constant 0 : i32
    %9 = arith.cmpi eq, %arg2, %c0_i32_8 : i32
    %10 = arith.extui %9 : i1 to i32
    %c0_i32_9 = arith.constant 0 : i32
    %11 = arith.cmpi ne, %10, %c0_i32_9 : i32
    scf.if %11 {
      %c0_10 = arith.constant 0 : index
      %c0_11 = arith.constant 0 : index
      %12 = vector.load %arg6[%c0_10, %c0_11] : memref<8x128xf32, #tpu.memory_space<vmem>>, vector<8x128xf32>
      %c0_12 = arith.constant 0 : index
      %c0_13 = arith.constant 0 : index
      %13 = vector.load %arg5[%c0_12, %c0_13] : memref<8x128xf32, #tpu.memory_space<vmem>>, vector<8x128xf32>
      tpu.vector_store %arg5[%c0_12, %c0_13], %12 {strides = array<i32>} : memref<8x128xf32, #tpu.memory_space<vmem>>, vector<8x128xf32>,
    } else {
    }
    return
  }
  func.func @transform_0(%arg0: i32, %arg1: i32, %arg2: i32) -> (i32, i32) {
    %c0_i32 = arith.constant 0 : i32
    return %arg0, %arg2 : i32, i32
  }
  func.func @transform_1(%arg0: i32, %arg1: i32, %arg2: i32) -> (i32, i32) {
    %c0_i32 = arith.constant 0 : i32
    return %arg2, %arg1 : i32, i32
  }
  func.func @transform_2(%arg0: i32, %arg1: i32, %arg2: i32) -> (i32, i32) {
    %c0_i32 = arith.constant 0 : i32
    return %arg0, %arg1 : i32, i32
  }
}

</mosaic_0001>

<bundles_post_ra>
// kernel: tpu_custom_call.1
= control target key start
LH: loop header
LB: loop body
LE: loop exit
PB: predicated region body
PF: predicated region fallthrough
CT: control target
= control target key end

     0   :  { %7 = vsyncpa [#allocation4], 0  ;;  %s267_s0 = inlined_call_operand.hbm [shape: f32[8,32], index: 0, kind: input, shape index: {}]   ;;  %s268_s1 = inlined_call_operand.hbm [shape: f32[32,128], index: 1, kind: input, shape index: {}]   ;;  %s269_s2 = inlined_call_operand.hbm [shape: f32[8,128], index: 2, kind: output, shape index: {}]  }
   0x1   :  { %8 = vsyncpa [#allocation7], 0 }
   0x2   :  { %9 = vsyncpa [#allocation5], 0  ;;  %s236_s9 = smov [#allocation3]   ;;  %s237_s11 = smov [#allocation6]  }
   0x3   :  { %s16_s10 = sshll.u32 %s236_s9, 4  ;;  %s25_s12 = sshll.u32 %s237_s11, 4  ;;  %s17_s10 = int_to_ptr.vmem [resolvable:$true] %s16_s10  ;;  %s26_s12 = int_to_ptr.vmem [resolvable:$true] %s25_s12 }
   0x4   :  { %s178_s13 = scalar_lea.vmem %s17_s10, 128  ;;  %p183_p1 = scmp.lt.s32.totalorder %s17_s10, %s17_s10 }
   0x5   :  { %p179_p0 = scmp.ne.s32.totalorder %s17_s10, %s178_s13  ;;  %p184_p2 = scmp.lt.s32.totalorder %s178_s13, %s178_s13 }
   0x7   :  { %p185_p3 = por %p184_p2, %p183_p1 }
   0x9   :  { %p186_p4 = pnand %p185_p3, %p179_p0 }
   0xb   :  { %189 = shalt.err (!%p186_p4)
}
   0xc   :  { %19 = dma.hbm_to_vmem [thread:$0]  %s267_s0, 128, %s17_s10, [#allocation4]  }
   0xd   :  { %s198_s16 = scalar_lea.vmem %s26_s12, 512  ;;  %p203_p6 = scmp.lt.s32.totalorder %s26_s12, %s26_s12 }
   0xe   :  { %p199_p5 = scmp.ne.s32.totalorder %s26_s12, %s198_s16  ;;  %p204_p7 = scmp.lt.s32.totalorder %s198_s16, %s198_s16 }
  0x10   :  { %p205_p8 = por %p204_p7, %p203_p6 }
  0x12   :  { %p206_p9 = pnand %p205_p8, %p199_p5 }
  0x14   :  { %209 = shalt.err (!%p206_p9)
}
  0x15   :  { %s238_s17 = smov 128   ;;  %s239_s18 = smov 8  }
  0x16   :  { %31 = dma.hbm_to_vmem [thread:$0]  %s268_s1, 512, %s26_s12, [#allocation7], %s238_s17, %s238_s17, %s239_s18  }
  0x17   :  { %230 = dma.done.wait [#allocation4], 128  }
  0x18   :  { %231 = vsyncadd [#allocation4], 4294967168 }
  0x19   :  { %232 = dma.done.wait [#allocation7], 512  }
  0x1a   :  { %233 = vsyncadd [#allocation7], 4294966784  ;;  %v240_v0 = vmov 0.0   ;;  %vm241_vm0 = vmmov 0   ;;  %v48_v1 = vld [vmem:[#allocation6 + $0x18] sm:$0xff]  ;;  %v47_v2 = vld [vmem:[#allocation6 + $0x10] sm:$0xff] }
  0x1b   :  { %152 = vmatprep.subr.mxu0 %v240_v0  ;;  %160 = vmatprep.mubr.msk.f32.mxu0 %vm241_vm0, %v240_v0  ;;  %v46_v3 = vld [vmem:[#allocation6 + $0x8] sm:$0xff]  ;;  %v45_v4 = vld [vmem:[#allocation6] sm:$0xff]  ;;  %v44_v5 = vld [vmem:[#allocation3] sm:$0xff]  ;;  %vm49_vm1 = vcmask 261120   ;;  %s242_s0 = smov [#allocation8]  }
  0x1c   :  { %153 = vmatpush3.msra.mxu0 %v48_v1  ;;  %s136_s1 = sshll.u32 %s242_s0, 4  ;;  %s137_s1 = int_to_ptr.vmem [resolvable:$true] %s136_s1 }
  0x1d   :  { %154 = vmatprep.subr.mxu0 %v240_v0  ;;  %s210_s21 = scalar_lea.vmem %s137_s1, 128  ;;  %p215_p11 = scmp.lt.s32.totalorder %s137_s1, %s137_s1 }
  0x1e   :  { %155 = vmatpush3.msra.mxu0 %v47_v2  ;;  %p211_p10 = scmp.ne.s32.totalorder %s137_s1, %s210_s21  ;;  %p216_p12 = scmp.lt.s32.totalorder %s210_s21, %s210_s21 }
  0x1f   :  { %156 = vmatprep.subr.mxu0 %v240_v0 }
  0x20   :  { %157 = vmatpush3.msra.mxu0 %v46_v3  ;;  %p217_p13 = por %p216_p12, %p215_p11 }
  0x21   :  { %158 = vmatprep.subr.mxu0 %v240_v0 }
  0x22   :  { %159 = vmatpush3.msra.mxu0 %v45_v4  ;;  %p218_p0 = pnand %p217_p13, %p211_p10 }
  0x23   :  { %161 = vmatmul.mubr.msk.f32.vlgmr.msra.gmra.mxu0 %vm49_vm1, %v44_v5 }
  0xe3   :  { %v119_v6 = vpop.f32.mrf.mxu0 }
  0xe4   :  { %129 = vst [vmem:[#allocation8] sm:$0xff] %v119_v6 }
  0xe5   :  { %v162_v7 = vpop.f32.mrf.mxu0 }
  0xe6   :  { %221 = shalt.err (!%p218_p0)
}
  0xe7   :  { %139 = dma.vmem_to_hbm [thread:$0]  %s137_s1, 128, %s269_s2, [#allocation5]  }
  0xe8   :  { %234 = dma.done.wait [#allocation5], 128  }
  0xe9   :  { %235 = vsyncadd [#allocation5], 4294967168 }
  0xea   :  { %143 = vsyncpa [#allocation4], 1 }
  0xeb   :  { %144 = vsyncpa [#allocation7], 1 }
  0xec   :  { %145 = vsyncpa [#allocation5], 1 }

</bundles_post_ra>
